<compile_context>
chip_gen: v5e
topology: v5e:2x2
jax: 0.10.0
libtpu: 0.0.40
codegen_flags: <defaults>
</compile_context>

<pallas_src>
import jax
import jax.numpy as jnp
from jax.experimental import pallas as pl
from jax.experimental.pallas import tpu as pltpu

_LANE = 128
_SUB = 8                                  # f32 sublane granularity for block shapes
_TARGET_BLOCK_BYTES = 2 * 1024 * 1024     # ~85%-of-roofline operating point (v6e data)
_MAX_BLOCK_BYTES = 6 * 1024 * 1024        # 4 double-buffered copies <= ~24 MiB (v7x-safe)
_VMEM_LIMIT_BYTES = 48 * 1024 * 1024      # < v7x 64 MiB physical; raises v5e 16 MiB default
_MIN_GRID_STEPS = 8                       # enough steps for 2 TCs + pipeline overlap


def _pixel_norm_kernel(x_ref, o_ref):
    # Block is (1, C, tn) or (1, C, ts, 128); the channel axis (axis=1) is fully
    # resident, so the per-pixel reduction never crosses blocks.
    x = x_ref[...].astype(jnp.float32)
    ss = jnp.sum(x * x, axis=1, keepdims=True)
    # No epsilon, sum (not mean): exactly the PyTorch forward. Padded tail lanes
    # may produce inf/NaN here, but their stores are masked, so results are safe.
    o_ref[...] = (x * jax.lax.rsqrt(ss)).astype(o_ref.dtype)


def _round_down(v, m):
    return max(m, (v // m) * m)


def pixel_norm(x):
    """x: (B, C, H, W). Returns X / sqrt(sum(X*X, axis=1, keepdims=True))."""
    B, C, H, W = x.shape
    HW = H * W
    itemsize = jnp.dtype(x.dtype).itemsize

    cost = pl.CostEstimate(
        flops=3 * B * C * HW,             # square + reduce + scale (negligible)
        transcendentals=B * HW,           # one rsqrt per pixel
        bytes_accessed=2 * B * C * HW * itemsize,
    )
    cparams = pltpu.CompilerParams(
        dimension_semantics=("parallel", "parallel"),
        vmem_limit_bytes=_VMEM_LIMIT_BYTES,
    )

    row_bytes = C * _LANE * itemsize      # one 128-lane spatial row, all channels
    use_4d = (HW % _LANE == 0) and (min(_SUB, HW // _LANE) * row_bytes <= _MAX_BLOCK_BYTES)

    if use_4d:
        # (B, C, S, 128): sublanes carry spatial rows -> no sublane padding for
        # small C; channel reduction is pure elementwise VPU work across vregs.
        S = HW // _LANE
        ts = max(1, min(_TARGET_BLOCK_BYTES // row_bytes, _MAX_BLOCK_BYTES // row_bytes))
        ts = min(ts, S)
        if ts < S:
            ts = _round_down(ts, _SUB)    # (8,128) block rule unless full extent
        while ts > _SUB and B * pl.cdiv(S, ts) < _MIN_GRID_STEPS:
            ts = _round_down(ts // 2, _SUB)
        xr = x.reshape(B, C, S, _LANE)
        grid = (B, pl.cdiv(S, ts))
        block = (1, C, ts, _LANE)
        index_map = lambda b, s: (b, 0, s, 0)
    else:
        # (B, C, HW): lane-dense spatial tiles, multiple of 128 (or full extent
        # when HW < 128); last grid step is a padded partial block.
        xr = x.reshape(B, C, HW)
        lane_budget = max(_LANE, min(_TARGET_BLOCK_BYTES // (C * itemsize),
                                     _MAX_BLOCK_BYTES // (C * itemsize)))
        tn = _round_down(lane_budget, _LANE)
        tn = min(tn, pl.cdiv(HW, _LANE) * _LANE)
        while tn > _LANE and B * pl.cdiv(HW, tn) < _MIN_GRID_STEPS:
            tn = _round_down(tn // 2, _LANE)
        if HW < _LANE:
            tn = HW                       # full-extent escape for tiny spatial dims
        grid = (B, pl.cdiv(HW, tn))
        block = (1, C, tn)
        index_map = lambda b, s: (b, 0, s)

    out = pl.pallas_call(
        _pixel_norm_kernel,
        out_shape=jax.ShapeDtypeStruct(xr.shape, x.dtype),
        grid=grid,
        in_specs=[pl.BlockSpec(block, index_map)],
        out_specs=pl.BlockSpec(block, index_map),
        compiler_params=cparams,
        cost_estimate=cost,
    )(xr)
    return out.reshape(B, C, H, W)


if __name__ == "__main__":
    key, key2 = jax.random.split(jax.random.PRNGKey(0))

    # Primary shape implied by the module (small-C path, HW % 128 == 0).
    batch, channels, height, width = 2, 4, 16, 16
    x = jax.random.normal(key, (batch, channels, height, width), dtype=jnp.float32)
    out = jax.block_until_ready(pixel_norm(x))
    ref = x / jnp.sqrt(jnp.sum(x * x, axis=1, keepdims=True))
    assert out.shape == x.shape
    assert jnp.allclose(out, ref, atol=1e-5, rtol=1e-5)

    # Secondary small shape: exercises the non-128-divisible spatial path
    # (cdiv grid with a padded partial tail block).
    x2 = jax.random.normal(key2, (1, 16, 12, 12), dtype=jnp.float32)
    out2 = jax.block_until_ready(pixel_norm(x2))
    ref2 = x2 / jnp.sqrt(jnp.sum(x2 * x2, axis=1, keepdims=True))
    assert jnp.allclose(out2, ref2, atol=1e-5, rtol=1e-5)

    print("KERNEL_OK")
</pallas_src>

<mosaic_0001>
module attributes {stable_mosaic.version = 11 : i64} {
  func.func @_pixel_norm_kernel(%arg0: i32, %arg1: i32, %arg2: memref<1x4x2x128xf32, #tpu.memory_space<vmem>>, %arg3: memref<1x4x2x128xf32, #tpu.memory_space<vmem>>) attributes {dimension_semantics = [#tpu.dimension_semantics<parallel>, #tpu.dimension_semantics<parallel>], iteration_bounds = array<i64: 2, 1>, scalar_prefetch = 0 : i64, scratch_operands = 0 : i64, tpu.core_type = #tpu.core_type<tc>, window_params = [{transform_indices = @transform_0, window_bounds = array<i64: 1, 4, 2, 128>}, {transform_indices = @transform_1, window_bounds = array<i64: 1, 4, 2, 128>}]} {
    %c0 = arith.constant 0 : index
    %c0_0 = arith.constant 0 : index
    %c0_1 = arith.constant 0 : index
    %c0_2 = arith.constant 0 : index
    %0 = vector.load %arg2[%c0, %c0_0, %c0_1, %c0_2] : memref<1x4x2x128xf32, #tpu.memory_space<vmem>>, vector<1x4x2x128xf32>
    %1 = arith.mulf %0, %0 : vector<1x4x2x128xf32>
    %cst = arith.constant dense<0.000000e+00> : vector<1x2x128xf32>
    %2 = vector.multi_reduction <add>, %1, %cst [1] : vector<1x4x2x128xf32> to vector<1x2x128xf32>
    %3 = vector.shape_cast %2 : vector<1x2x128xf32> to vector<1x1x2x128xf32>
    %4 = math.rsqrt %3 : vector<1x1x2x128xf32>
    %5 = vector.broadcast %4 : vector<1x1x2x128xf32> to vector<1x4x2x128xf32>
    %6 = arith.mulf %0, %5 : vector<1x4x2x128xf32>
    %c0_3 = arith.constant 0 : index
    %c0_4 = arith.constant 0 : index
    %c0_5 = arith.constant 0 : index
    %c0_6 = arith.constant 0 : index
    %7 = vector.load %arg3[%c0_3, %c0_4, %c0_5, %c0_6] : memref<1x4x2x128xf32, #tpu.memory_space<vmem>>, vector<1x4x2x128xf32>
    tpu.vector_store %arg3[%c0_3, %c0_4, %c0_5, %c0_6], %6 {strides = array<i32>} : memref<1x4x2x128xf32, #tpu.memory_space<vmem>>, vector<1x4x2x128xf32>,
    return
  }
  func.func @transform_0(%arg0: i32, %arg1: i32) -> (i32, i32, i32, i32) {
    %c0_i32 = arith.constant 0 : i32
    %c0_i32_0 = arith.constant 0 : i32
    %c0_i32_1 = arith.constant 0 : i32
    return %arg0, %c0_i32, %arg1, %c0_i32_0 : i32, i32, i32, i32
  }
  func.func @transform_1(%arg0: i32, %arg1: i32) -> (i32, i32, i32, i32) {
    %c0_i32 = arith.constant 0 : i32
    %c0_i32_0 = arith.constant 0 : i32
    %c0_i32_1 = arith.constant 0 : i32
    return %arg0, %c0_i32, %arg1, %c0_i32_0 : i32, i32, i32, i32
  }
}

</mosaic_0001>

<bundles_post_ra>
// kernel: tpu_custom_call.1
= control target key start
LH: loop header
LB: loop body
LE: loop exit
PB: predicated region body
PF: predicated region fallthrough
CT: control target
= control target key end

     0   :  { %6 = vsyncpa [#allocation3], 0  ;;  %s627_s0 = inlined_call_operand.hbm [shape: f32[2,4,2,128], index: 0, kind: input, shape index: {}]   ;;  %s628_s1 = inlined_call_operand.hbm [shape: f32[2,4,2,128], index: 1, kind: output, shape index: {}]  }
   0x1   :  { %8 = vsyncpa [#allocation3 + $0x1], 0 }
   0x2   :  { %9 = vsyncpa [#allocation4], 0 }
   0x3   :  { %11 = vsyncpa [#allocation4 + $0x1], 0  ;;  %s503_s6 = smov 0   ;;  %s505_s7 = smov 0  }
   0x4   :  { %s507_s8 = smov 0   ;;  %s509_s9 = smov 0  }
   0x5   :  { %s511_s10 = smov 0   ;;  %s513_s11 = smov 0  }
   0x6 LB: > { %s290_s12 = sadd.s32 4294967295, %s487_s11   ;;  %s291_s13 = sadd.s32 4294967294, %s487_s11   ;;  %s487_s11 = sphi %s513_s11, %s17_s11   ;;  %s483_s10 = sphi %s511_s10, %s637_s10   ;;  %s479_s9 = sphi %s509_s9, %s636_s9   ;;  %s475_s8 = sphi %s507_s8, %s635_s8   ;;  %s471_s7 = sphi %s505_s7, %s634_s7   ;;  %s467_s6 = sphi %s503_s6, %s633_s6  }
   0x7   : > { %s29_s14 = sadd.s32 1, %s483_s10  ;;  %s38_s15 = sadd.s32 1, %s475_s8 }
   0x8   : > { %p31_p0 = scmp.ge.s32.totalorder %s29_s14, 2  ;;  %p45_p1 = scmp.ne.s32.totalorder %s475_s8, %s471_s7 }
   0x9   : > { %p46_p2 = scmp.eq.s32.totalorder %s487_s11, 0  ;;  %p51_p3 = scmp.ne.s32.totalorder %s471_s7, %s467_s6 }
   0xa   : > { %s639_s14 = smov (%p31_p0, %s29_s14), 0  ;;  %p52_p5 = scmp.eq.s32.totalorder %s290_s12, 0 }
   0xb   : > { %p544_p4 = por %p46_p2, %p45_p1  ;;  %s33_s17 = ssub.s32 %s483_s10, %s639_s14 }
   0xc   : > { %p77_p6 = scmp.eq.s32.totalorder %s290_s12, 1  ;;  %p36_p7 = scmp.eq.s32.totalorder %s33_s17, 0 }
   0xd   : > { %p550_p8 = por %p52_p5, %p51_p3  ;;  %p83_p10 = scmp.eq.s32.totalorder %s291_s13, 1 }
   0xe   : > { %p554_p9 = por %p77_p6, %p45_p1  ;;  %p293_p12 = scmp.ge.s32.totalorder %s487_s11, 2 }
   0xf   : > { %s559_s20 = scalar_select %p36_p7, %s475_s8, %s38_s15  }
  0x10   : > { %p561_p11 = por %p83_p10, %p51_p3  ;;  %p319_p13 = scmp.lt.s32.totalorder %s487_s11, 2 }
  0x11   : > { %s103_s22 = sand.u32 1, %s475_s8   ;;  %s305_s24 = sshll.u32 %s483_s10, 3 }
  0x12   : > { %s294_s23 = sshll.u32 %s103_s22, 3  ;;  %s113_s27 = scalar_lea.hbm %s627_s0, %s305_s24 }
  0x13   : > { %s107_s28 = scalar_lea.vmem [#allocation2], %s294_s23  ;;  %s114_s30 = sshll.u32 %s113_s27, 4  ;;  %s115_s30 = int_to_ptr.hbm [resolvable:$true] %s114_s30 }
  0x14   : > { %s116_s29 = sshll.u32 %s107_s28, 4  ;;  %p312_p0 = pnand %p319_p13, %p544_p4  ;;  %s117_s29 = int_to_ptr.vmem [resolvable:$true] %s116_s29 }
  0x15   : > { %p297_p1 = scmp.ge.s32.totalorder %s487_s11, 1  ;;  %s104_s2 = scalar_lea.sflag [#allocation3], %s103_s22 }
  0x16   : > { %s489_s3 = smov 32   ;;  %s490_s4 = smov 2  }
  0x17   : > { %314 = dma.hbm_to_vmem [thread:$0]  (!%p312_p0), %s115_s30, 128, %s117_s29, %s104_s2, %s489_s3, %s489_s3, %s490_s4  }
  0x18   : > { %p124_p2 = scmp.lt.s32.totalorder %s487_s11, 3 }
  0x1a   : > { %p125_p3 = pnand %p297_p1, %p124_p2 }
  0x1b   : > { %s577_s5 = sand.u32 (!%p125_p3), 1, %s471_s7  }
  0x1c   : > { %128 = sbr.rel (%p125_p3) target bundleno = 71 (0x47), region = 24  ;;  %s298_s12 = sshll.u32 (!%p125_p3), %s577_s5, 3 }
  0x1d   : > { %s131_s13 = scalar_lea.sflag (!%p125_p3), [#allocation3], %s577_s5  ;;  %s134_s15 = scalar_lea.vmem (!%p125_p3), [#allocation2], %s298_s12 }
  0x21   : > { %458 = dma.done.wait (%p550_p8), %s131_s13, 128  }
  0x22   : > { %460 = vsyncadd (%p550_p8), %s131_s13, 4294967168  ;;  %vm162_vm0 = vcmask 1041408   ;;  %v154_v0 = vld [vmem:[%s134_s15] sm:$0x3]  ;;  %v155_v1 = vld [vmem:[%s134_s15 + $0x2] sm:$0x3] }
  0x23   : > { %v156_v2 = vld [vmem:[%s134_s15 + $0x4] sm:$0x3]  ;;  %v157_v3 = vld [vmem:[%s134_s15 + $0x6] sm:$0x3]  ;;  %v158_v4 = vmul.f32 %v154_v0, %v154_v0  ;;  %v159_v5 = vmul.f32 %v155_v1, %v155_v1  ;;  %s306_s16 = sshll.u32 %s479_s9, 3  ;;  %s153_s23 = scalar_lea.vmem [#allocation5], %s298_s12 }
  0x24   : > { %v160_v6 = vmul.f32 %v156_v2, %v156_v2  ;;  %v161_v7 = vmul.f32 %v157_v3, %v157_v3  ;;  %s201_s22 = scalar_lea.hbm %s628_s1, %s306_s16  ;;  %s202_s24 = sshll.u32 %s153_s23, 4  ;;  %s203_s24 = int_to_ptr.vmem [resolvable:$true] %s202_s24 }
  0x25   : > { %v163_v8 = vsel %vm162_vm0, %v158_v4, 0.0  ;;  %v164_v9 = vsel %vm162_vm0, %v159_v5, 0.0  ;;  %s204_s25 = sshll.u32 %s201_s22, 4  ;;  %s189_s9 = scalar_lea.sflag [#allocation4], %s577_s5  ;;  %s205_s25 = int_to_ptr.hbm [resolvable:$true] %s204_s25 }
  0x26   : > { %v166_v10 = vsel %vm162_vm0, %v160_v6, 0.0  ;;  %v165_v11 = vadd.f32 %v164_v9, %v163_v8  ;;  %v168_v12 = vsel %vm162_vm0, %v161_v7, 0.0  ;;  %s419_s26 = sshra.s32 %s205_s25, 4  ;;  %s425_s30 = scalar_lea.hbm %s628_s1, 16  ;;  %s420_s26 = int_to_ptr.hbm [resolvable:$true] %s419_s26 }
  0x27   : > { %s421_s27 = scalar_lea.hbm %s420_s26, 8  ;;  %p426_p7 = scmp.lt.s32.totalorder %s420_s26, %s628_s1 }
  0x28   : > { %v167_v13 = vadd.f32 %v166_v10, %v165_v11  ;;  %p422_p4 = scmp.ne.s32.totalorder %s420_s26, %s421_s27  ;;  %p427_p8 = scmp.lt.s32.totalorder %s425_s30, %s421_s27 }
  0x2a   : > { %v169_v14 = vadd.f32 %v168_v12, %v167_v13  ;;  %p423_p5 = pnand %p422_p4, %p554_p9  ;;  %p428_p10 = por %p427_p8, %p426_p7 }
  0x2c   : > { %373 = vrsqrt.f32 %v169_v14  ;;  %vm176_vm1 = vweird.f32 %v169_v14  ;;  %p424_p6 = pneg %p423_p5 }
  0x2e   : > { %p429_p13 = pnand %p428_p10, %p424_p6 }
  0x32   : > { %v374_v15 = vpop.eup %373 }
  0x33   : > { %v171_v16 = vmul.f32 %v374_v15, %v169_v14  ;;  %vm177_vm2 = vweird.f32 %v374_v15 }
  0x34   : > { %vm178_vm3 = vmor %vm176_vm1, %vm177_vm2 }
  0x35   : > { %v172_v17 = vmul.f32 %v374_v15, %v171_v16 }
  0x37   : > { %v173_v18 = vmul.f32 0.5, %v172_v17 }
  0x39   : > { %v174_v19 = vsub.f32 1.5, %v173_v18 }
  0x3b   : > { %v175_v20 = vmul.f32 %v374_v15, %v174_v19 }
  0x3d   : > { %v179_v21 = vsel %vm178_vm3, %v374_v15, %v175_v20 }
  0x3e   : > { %v180_v22 = vmul.f32 %v179_v21, %v154_v0  ;;  %v181_v23 = vmul.f32 %v179_v21, %v155_v1  ;;  %v182_v24 = vmul.f32 %v179_v21, %v156_v2  ;;  %v183_v25 = vmul.f32 %v179_v21, %v157_v3 }
  0x40   : > { %184 = vst [vmem:[%s153_s23] sm:$0x3] %v180_v22 }
  0x41   : > { %185 = vst [vmem:[%s153_s23 + $0x2] sm:$0x3] %v181_v23 }
  0x42   : > { %186 = vst [vmem:[%s153_s23 + $0x4] sm:$0x3] %v182_v24 }
  0x43   : > { %187 = vst [vmem:[%s153_s23 + $0x6] sm:$0x3] %v183_v25 }
  0x44   : > { %432 = shalt.err (!%p429_p13)
}
  0x45   : > { %s491_s4 = smov 32   ;;  %s492_s5 = smov 2  }
  0x46   : > { %309 = dma.vmem_to_hbm [thread:$0]  (%p554_p9), %s203_s24, 128, %s205_s25, %s189_s9, %s491_s4, %s491_s4, %s492_s5  }
  0x47 PF: > { %s219_s12 = sand.u32 1, %s467_s6   ;;  %p316_p0 = pnand %p293_p12, %p561_p11 }
  0x48   : > { %s220_s13 = scalar_lea.sflag [#allocation4], %s219_s12 }
  0x49   : > { %p317_p1 = pneg %p316_p0 }
  0x4b   : > { %462 = dma.done.wait (%p317_p1), %s220_s13, 128  }
  0x4c   : > { %464 = vsyncadd (%p317_p1), %s220_s13, 4294967168  ;;  %s17_s11 = sadd.s32 1, %s487_s11   ;;  %s633_s6 = smov %s471_s7 }
  0x4d   : > { %p14_p2 = scmp.ge.s32.totalorder %s17_s11, 4   ;;  %s634_s7 = smov %s475_s8 }
  0x4e   : > { %s635_s8 = smov %s559_s20  ;;  %s636_s9 = smov %s483_s10 }
  0x4f   : > { %s637_s10 = smov %s639_s14  ;;  %16 = sbr.rel (!%p14_p2) target bundleno = 6 (0x6), region = 69 }
  0x54   :  { %226 = vsyncpa [#allocation3], 1 }
  0x55   :  { %228 = vsyncpa [#allocation3 + $0x1], 1 }
  0x56   :  { %229 = vsyncpa [#allocation4], 1 }
  0x57   :  { %231 = vsyncpa [#allocation4 + $0x1], 1 }

</bundles_post_ra>
